<compile_context>
chip_gen: v7x
topology: tpu7x:2x2x1
jax: 0.10.0
libtpu: 0.0.40
codegen_flags: <defaults>
</compile_context>

<pallas_src>
import jax
import jax.numpy as jnp
from jax.experimental import pallas as pl
from jax.experimental.pallas import tpu as pltpu

H = 150       # hidden size fixed by the module
H_PAD = 256   # lane/sublane-dense padded hidden size (2 full 128-lane tiles)


def _round_up(n: int, m: int) -> int:
    return ((n + m - 1) // m) * m


def _choose_tile(B: int):
    """Pick (TB, B_pad): TB multiple of 8, minimal zero-row padding, prefer >=2 grid steps."""
    B8 = _round_up(B, 8)
    opts = [tb for tb in (512, 256, 128, 64) if tb <= B8]
    if not opts:
        return B8, B8  # tiny batch: single tile, no padding beyond sublane multiple

    def key(tb):
        bpad = _round_up(B8, tb)
        steps = bpad // tb
        # minimize padded rows; among ties prefer >=2 steps (megacore), then larger tile
        return (bpad - B, 0 if steps >= 2 else 1, -tb)

    tb = min(opts, key=key)
    return tb, _round_up(B8, tb)


def _mlp_kernel(x_ref, w1_ref, b1_ref, w2_ref, b2_ref, out_ref):
    """Fused forward for one batch tile: relu(x @ W1 + b1) @ W2 + b2.

    MXU operands bf16, accumulation + elementwise (bias, ReLU) in f32.
    """
    x = x_ref[...].astype(jnp.bfloat16)
    h = jnp.dot(x, w1_ref[...], preferred_element_type=jnp.float32)      # (TB, H_PAD) f32
    h = jnp.maximum(h + b1_ref[...], 0.0)                                # VPU in f32
    y = jnp.dot(h.astype(jnp.bfloat16), w2_ref[...],
                preferred_element_type=jnp.float32)                      # (TB, out) f32
    out_ref[...] = (y + b2_ref[...]).astype(out_ref.dtype)


def prepare_params(w1, b1, w2, b2):
    """One-time prep: zero-pad hidden dim to H_PAD and pre-cast matmul weights to bf16.

    w1: (in_size, H)  (pre-transposed vs PyTorch's (H, in_size))
    b1: (1, H)
    w2: (H, out_size)
    b2: (1, out_size)
    Padding is exact: ReLU(0)=0 and padded w2 rows are zero.
    """
    in_size = w1.shape[0]
    out_size = w2.shape[1]
    w1p = jnp.zeros((in_size, H_PAD), jnp.float32).at[:, :H].set(w1).astype(jnp.bfloat16)
    b1p = jnp.zeros((1, H_PAD), jnp.float32).at[:, :H].set(b1)
    w2p = jnp.zeros((H_PAD, out_size), jnp.float32).at[:H, :].set(w2).astype(jnp.bfloat16)
    b2p = jnp.asarray(b2, jnp.float32).reshape(1, out_size)
    return w1p, b1p, w2p, b2p


@jax.jit
def neuralnet_forward(x, w1p, b1p, w2p, b2p):
    """Pallas equivalent of NeuralNet.forward.

    x: (B, in_size) f32; padded params come from prepare_params().
    Returns (B, out_size) f32.
    """
    B, in_size = x.shape
    out_size = w2p.shape[1]

    TB, B_pad = _choose_tile(B)
    x_pad = x if B_pad == B else jnp.zeros((B_pad, in_size), x.dtype).at[:B].set(x)

    y_pad = pl.pallas_call(
        _mlp_kernel,
        out_shape=jax.ShapeDtypeStruct((B_pad, out_size), jnp.float32),
        grid=(B_pad // TB,),
        in_specs=[
            pl.BlockSpec((TB, in_size), lambda i: (i, 0)),       # x: streamed per batch tile
            pl.BlockSpec((in_size, H_PAD), lambda i: (0, 0)),    # weights stay VMEM-resident
            pl.BlockSpec((1, H_PAD), lambda i: (0, 0)),
            pl.BlockSpec((H_PAD, out_size), lambda i: (0, 0)),
            pl.BlockSpec((1, out_size), lambda i: (0, 0)),
        ],
        out_specs=pl.BlockSpec((TB, out_size), lambda i: (i, 0)),
        compiler_params=pltpu.CompilerParams(
            dimension_semantics=("parallel",),   # independent batch tiles -> megacore on v7x
            vmem_limit_bytes=32 << 20,
        ),
    )(x_pad, w1p, b1p, w2p, b2p)

    return y_pad if B_pad == B else y_pad[:B]


def init_params(key, in_size, out_size):
    """Deterministic init mimicking PyTorch nn.Linear default (U[-1/sqrt(fan_in), +])."""
    k1, k2, k3, k4 = jax.random.split(key, 4)
    bound1 = 1.0 / jnp.sqrt(in_size)
    bound2 = 1.0 / jnp.sqrt(H)
    # stored pre-transposed: (in, H) and (H, out)
    w1 = jax.random.uniform(k1, (in_size, H), jnp.float32, -bound1, bound1)
    b1 = jax.random.uniform(k2, (1, H), jnp.float32, -bound1, bound1)
    w2 = jax.random.uniform(k3, (H, out_size), jnp.float32, -bound2, bound2)
    b2 = jax.random.uniform(k4, (1, out_size), jnp.float32, -bound2, bound2)
    return w1, b1, w2, b2


if __name__ == "__main__":
    key = jax.random.PRNGKey(0)
    kx, kp = jax.random.split(key)

    batch = 8
    in_size = 32
    out_size = 4

    x = jax.random.normal(kx, (batch, in_size), jnp.float32)
    w1, b1, w2, b2 = init_params(kp, in_size, out_size)

    # one-time weight prep (padding + bf16 cast hoisted out of the per-call forward)
    w1p, b1p, w2p, b2p = prepare_params(w1, b1, w2, b2)

    y = neuralnet_forward(x, w1p, b1p, w2p, b2p)
    jax.block_until_ready(y)

    # f32 reference of the same forward; tolerance accounts for bf16 MXU operands
    ref = jnp.maximum(x @ w1 + b1, 0.0) @ w2 + b2
    assert y.shape == (batch, out_size), f"bad output shape {y.shape}"
    assert jnp.allclose(y, ref, atol=3e-2, rtol=3e-2), "mismatch vs reference"

    print("KERNEL_OK")
</pallas_src>

<mosaic_0001>
module attributes {stable_mosaic.version = 11 : i64} {
  func.func @_mlp_kernel(%arg0: i32, %arg1: memref<8x32xf32, #tpu.memory_space<vmem>>, %arg2: memref<32x256xbf16, #tpu.memory_space<vmem>>, %arg3: memref<1x256xf32, #tpu.memory_space<vmem>>, %arg4: memref<256x4xbf16, #tpu.memory_space<vmem>>, %arg5: memref<1x4xf32, #tpu.memory_space<vmem>>, %arg6: memref<8x4xf32, #tpu.memory_space<vmem>>) attributes {dimension_semantics = [#tpu.dimension_semantics<parallel>], iteration_bounds = array<i64: 1>, scalar_prefetch = 0 : i64, scratch_operands = 0 : i64, tpu.core_type = #tpu.core_type<tc>, window_params = [{transform_indices = @transform_0, window_bounds = array<i64: 8, 32>}, {pipeline_mode = #tpu.pipeline_mode<synchronous>, transform_indices = @transform_1, window_bounds = array<i64: 32, 256>}, {pipeline_mode = #tpu.pipeline_mode<synchronous>, transform_indices = @transform_2, window_bounds = array<i64: 1, 256>}, {pipeline_mode = #tpu.pipeline_mode<synchronous>, transform_indices = @transform_3, window_bounds = array<i64: 256, 4>}, {pipeline_mode = #tpu.pipeline_mode<synchronous>, transform_indices = @transform_4, window_bounds = array<i64: 1, 4>}, {transform_indices = @transform_5, window_bounds = array<i64: 8, 4>}]} {
    %c0 = arith.constant 0 : index
    %c0_0 = arith.constant 0 : index
    %0 = vector.load %arg1[%c0, %c0_0] : memref<8x32xf32, #tpu.memory_space<vmem>>, vector<8x32xf32>
    %1 = arith.truncf %0 : vector<8x32xf32> to vector<8x32xbf16>
    %c0_1 = arith.constant 0 : index
    %c0_2 = arith.constant 0 : index
    %2 = vector.load %arg2[%c0_1, %c0_2] : memref<32x256xbf16, #tpu.memory_space<vmem>>, vector<32x256xbf16>
    %cst = arith.constant dense<0.000000e+00> : vector<8x256xf32>
    %3 = tpu.matmul %1, %2, %cst {dimension_numbers = #tpu.dot_dimension_numbers<[1], [0], [0], [1], [0, 0, 1, 1], [], []>} : vector<8x32xbf16>, vector<32x256xbf16>, vector<8x256xf32> -> vector<8x256xf32>
    %c0_3 = arith.constant 0 : index
    %c0_4 = arith.constant 0 : index
    %4 = vector.load %arg3[%c0_3, %c0_4] : memref<1x256xf32, #tpu.memory_space<vmem>>, vector<1x256xf32>
    %5 = vector.broadcast %4 : vector<1x256xf32> to vector<8x256xf32>
    %6 = arith.addf %3, %5 : vector<8x256xf32>
    %cst_5 = arith.constant 0.000000e+00 : f32
    %7 = vector.broadcast %cst_5 : f32 to vector<8x256xf32>
    %8 = arith.maximumf %6, %7 : vector<8x256xf32>
    %9 = arith.truncf %8 : vector<8x256xf32> to vector<8x256xbf16>
    %c0_6 = arith.constant 0 : index
    %c0_7 = arith.constant 0 : index
    %10 = vector.load %arg4[%c0_6, %c0_7] : memref<256x4xbf16, #tpu.memory_space<vmem>>, vector<256x4xbf16>
    %cst_8 = arith.constant dense<0.000000e+00> : vector<8x4xf32>
    %11 = tpu.matmul %9, %10, %cst_8 {dimension_numbers = #tpu.dot_dimension_numbers<[1], [0], [0], [1], [0, 0, 1, 1], [], []>} : vector<8x256xbf16>, vector<256x4xbf16>, vector<8x4xf32> -> vector<8x4xf32>
    %c0_9 = arith.constant 0 : index
    %c0_10 = arith.constant 0 : index
    %12 = vector.load %arg5[%c0_9, %c0_10] : memref<1x4xf32, #tpu.memory_space<vmem>>, vector<1x4xf32>
    %13 = vector.broadcast %12 : vector<1x4xf32> to vector<8x4xf32>
    %14 = arith.addf %11, %13 : vector<8x4xf32>
    %c0_11 = arith.constant 0 : index
    %c0_12 = arith.constant 0 : index
    %15 = vector.load %arg6[%c0_11, %c0_12] : memref<8x4xf32, #tpu.memory_space<vmem>>, vector<8x4xf32>
    tpu.vector_store %arg6[%c0_11, %c0_12], %14 {strides = array<i32>} : memref<8x4xf32, #tpu.memory_space<vmem>>, vector<8x4xf32>,
    return
  }
  func.func @transform_0(%arg0: i32) -> (i32, i32) {
    %c0_i32 = arith.constant 0 : i32
    %c0_i32_0 = arith.constant 0 : i32
    return %arg0, %c0_i32 : i32, i32
  }
  func.func @transform_1(%arg0: i32) -> (i32, i32) {
    %c0_i32 = arith.constant 0 : i32
    %c0_i32_0 = arith.constant 0 : i32
    %c0_i32_1 = arith.constant 0 : i32
    return %c0_i32, %c0_i32_0 : i32, i32
  }
  func.func @transform_2(%arg0: i32) -> (i32, i32) {
    %c0_i32 = arith.constant 0 : i32
    %c0_i32_0 = arith.constant 0 : i32
    %c0_i32_1 = arith.constant 0 : i32
    return %c0_i32, %c0_i32_0 : i32, i32
  }
  func.func @transform_3(%arg0: i32) -> (i32, i32) {
    %c0_i32 = arith.constant 0 : i32
    %c0_i32_0 = arith.constant 0 : i32
    %c0_i32_1 = arith.constant 0 : i32
    return %c0_i32, %c0_i32_0 : i32, i32
  }
  func.func @transform_4(%arg0: i32) -> (i32, i32) {
    %c0_i32 = arith.constant 0 : i32
    %c0_i32_0 = arith.constant 0 : i32
    %c0_i32_1 = arith.constant 0 : i32
    return %c0_i32, %c0_i32_0 : i32, i32
  }
  func.func @transform_5(%arg0: i32) -> (i32, i32) {
    %c0_i32 = arith.constant 0 : i32
    %c0_i32_0 = arith.constant 0 : i32
    return %arg0, %c0_i32 : i32, i32
  }
}

</mosaic_0001>

<bundles_post_ra>
// kernel: neuralnet_forward.1
= control target key start
LH: loop header
LB: loop body
LE: loop exit
PB: predicated region body
PF: predicated region fallthrough
CT: control target
= control target key end

     0   :  { %v356_v1 = vmov 0   ;;  %vm59_vm0 = vcmask 261120   ;;  %v29_v23 = vlaneseq  ;;  %vm283_vm1 = vcmask 31744   ;;  %s459_s1 = inlined_call_operand.vmem [shape: bf16[32,256], index: 1, kind: input, shape index: {}]   ;;  %s460_s0 = inlined_call_operand.vmem [shape: f32[8,32], index: 0, kind: input, shape index: {}]   ;;  %s461_s3 = inlined_call_operand.vmem [shape: bf16[256,4], index: 3, kind: input, shape index: {}]   ;;  %s462_s2 = inlined_call_operand.vmem [shape: f32[1,256], index: 2, kind: input, shape index: {}]   ;;  %s463_s4 = inlined_call_operand.vmem [shape: f32[1,4], index: 4, kind: input, shape index: {}]   ;;  %s464_s5 = inlined_call_operand.vmem [shape: f32[8,4], index: 5, kind: output, shape index: {}]  }
   0x1   :  { %v334_v0 = vld [vmem:[%s459_s1 + $0x4] ss:$8 sps:$4 sm:$0xff]   ;;  %95 = vmatprep.mubr.bf16.mxu0 %v356_v1  ;;  %v336_v2 = vld [vmem:[%s459_s1] ss:$8 sps:$4 sm:$0xff]   ;;  %v337_v3 = vld [vmem:[%s459_s1 + $0x14] ss:$8 sps:$4 sm:$0xff]  }
   0x2   :  { %63 = vmatprep.subr.bf16.mxu0 %v334_v0  ;;  %v339_v4 = vld [vmem:[%s459_s1 + $0x10] ss:$8 sps:$4 sm:$0xff]   ;;  %v21_v5 = vld [vmem:[%s460_s0] sm:$0xff]  ;;  %v342_v8 = vld [vmem:[%s461_s3 + $0x48] sm:$0xff]   ;;  %v30_v24 = vshrl.u32 %v29_v23, 7 }
   0x3   :  { %64 = vmatpush1.bf16.msra.mxu0 %v336_v2  ;;  %v340_v6 = vld [vmem:[%s461_s3 + $0x40] sm:$0xff]   ;;  %v22_v9 = vpack.c.bf16 %v21_v5, %v21_v5  ;;  %v343_v10 = vld [vmem:[%s461_s3 + $0x8] sm:$0xff]   ;;  %v344_v11 = vld [vmem:[%s461_s3 + $0x50] sm:$0xff]  }
   0x4   :  { %65 = vmatprep.subr.bf16.mxu0 %v337_v3  ;;  %v341_v7 = vld [vmem:[%s461_s3] sm:$0xff]   ;;  %311 = vmatprep.subr.bf16.mxu1 %v340_v6  ;;  %v345_v12 = vld [vmem:[%s461_s3 + $0x10] sm:$0xff]   ;;  %v346_v13 = vld [vmem:[%s461_s3 + $0x58] sm:$0xff]   ;;  %v31_v25 = vsub.s32 0, %v30_v24  ;;  %v35_v27 = vsub.s32 1, %v30_v24 }
   0x5   :  { %312 = vmatpush3.bf16.msra.mxu1 %v341_v7  ;;  %v347_v14 = vld [vmem:[%s461_s3 + $0x18] sm:$0xff]   ;;  %v348_v15 = vld [vmem:[%s461_s3 + $0x60] sm:$0xff]   ;;  %v350_v17 = vld [vmem:[%s461_s3 + $0x68] sm:$0xff]  }
   0x6   :  { %313 = vmatprep.subr.bf16.mxu1 %v342_v8  ;;  %v349_v16 = vld [vmem:[%s461_s3 + $0x20] sm:$0xff]   ;;  %v351_v18 = vld [vmem:[%s461_s3 + $0x28] sm:$0xff]   ;;  %v352_v19 = vld [vmem:[%s461_s3 + $0x70] sm:$0xff]  }
   0x7   :  { %66 = vmatpush1.bf16.msra.mxu0 %v339_v4  ;;  %v353_v20 = vld [vmem:[%s461_s3 + $0x30] sm:$0xff]   ;;  %v354_v21 = vld [vmem:[%s461_s3 + $0x78] sm:$0xff]   ;;  %v27_v26 = vld [vmem:[%s462_s2] sm:$0x3] }
   0x8   :  { %v355_v22 = vld [vmem:[%s461_s3 + $0x38] sm:$0xff]   ;;  %v32_v28 = vrot.slane %v27_v26, %v31_v25  ;;  %v36_v29 = vrot.slane %v27_v26, %v35_v27  ;;  %v294_v41 = vld [vmem:[%s463_s4] ss:$0 sm:$0xff] }
   0x9   :  { %314 = vmatpush3.bf16.msra.mxu1 %v343_v10 }
   0xa   :  { %293 = vmatmul.mubr.msk.bf16.vlgmr.msra.gmra.mrb[0].mxu0 %vm59_vm0, %v22_v9  ;;  %315 = vmatprep.subr.bf16.mxu1 %v344_v11 }
   0xd   :  { %316 = vmatpush3.bf16.msra.mxu1 %v345_v12 }
   0xe   :  { %317 = vmatprep.subr.bf16.mxu1 %v346_v13 }
  0x11   :  { %318 = vmatpush3.bf16.msra.mxu1 %v347_v14 }
  0x12   :  { %319 = vmatprep.subr.bf16.mxu1 %v348_v15 }
  0x15   :  { %320 = vmatpush3.bf16.msra.mxu1 %v349_v16 }
  0x16   :  { %321 = vmatprep.subr.bf16.mxu1 %v350_v17 }
  0x19   :  { %322 = vmatpush3.bf16.msra.mxu1 %v351_v18 }
  0x1a   :  { %323 = vmatprep.subr.bf16.mxu1 %v352_v19 }
  0x1d   :  { %324 = vmatpush3.bf16.msra.mxu1 %v353_v20 }
  0x1e   :  { %325 = vmatprep.subr.bf16.mxu1 %v354_v21 }
  0x21   :  { %326 = vmatpush3.bf16.msra.mxu1 %v355_v22 }
  0xdd   :  { %v97_v30 = vpop.f32.mrb[0].mxu0 }
  0xde   :  { %v98_v31 = vadd.f32 %v97_v30, %v32_v28  ;;  %v99_v32 = vpop.f32.mrb[1].mxu0 }
  0xdf   :  { %v100_v33 = vadd.f32 %v99_v32, %v36_v29  ;;  %v101_v34 = vpop.f32.mrb[2].mxu0 }
  0xe0   :  { %v104_v35 = vmax.f32 %v98_v31, 0.0  ;;  %v102_v36 = vpop.f32.mrb[3].mxu0 }
  0xe1   :  { %v105_v37 = vmax.f32 %v100_v33, 0.0 }
  0xe2   :  { %v106_v39 = vpack.c.bf16 %v104_v35, %v104_v35 }
  0xe3   :  { %v107_v38 = vpack.c.bf16 %v105_v37, %v105_v37 }
  0xe5   :  { %275 = vmatprep.mubr.bf16.mxu1 %v107_v38 }
  0xe6   :  { %276 = vmatmul.mubr.bf16.vlgmr.msra.gmra.mrb[0].mxu1 %v106_v39 }
 0x1b9   :  { %v327_v40 = vpop.f32.mrb[0].mxu1 }
 0x1ba   :  { %v328_v42 = vpop.f32.mrb[1].mxu1 }
 0x1bb   :  { %v329_v43 = vadd.f32 %v328_v42, %v327_v40  ;;  %v330_v44 = vpop.f32.mrb[2].mxu1 }
 0x1bc   :  { %v331_v45 = vpop.f32.mrb[3].mxu1 }
 0x1bd   :  { %v278_v46 = vadd.f32 %v329_v43, %v294_v41 }
 0x1bf   :  { %284 = vst.msk [vmem:[%s464_s5] sm:$0xff] %vm283_vm1, %v278_v46 }

</bundles_post_ra>
